<compile_context>
chip_gen: v6e
topology: v6e:2x2x1
jax: 0.10.0
libtpu: 0.0.40
codegen_flags: <defaults>
</compile_context>

<pallas_src>
import functools

import jax
import jax.numpy as jnp
import numpy as np
from jax.experimental import pallas as pl
from jax.experimental.pallas import tpu as pltpu


_ROW_BYTES = 8 * 128 * 4   # one sublane-padded (1, 128) f32 row block in VMEM (4 KiB)


def _pad_rows(rows, itemsize):
    """Rows actually occupied in VMEM once sublane packing/padding is applied."""
    mult = 8 * max(1, 4 // itemsize)          # f32 -> 8, bf16 -> 16, int8 -> 32
    return -(-rows // mult) * mult


def _plan_tiling(n_frames, num_classes, num_pixels, logit_itemsize, tgt_itemsize,
                 budget_bytes=8 << 20):
    """Returns (frames_per_block G, pixel_tile, padded_pixels, n_k, vmem_estimate)."""
    # Padded VMEM bytes for one frame, one 128-pixel column, single buffer
    # (logits tile + label tile).
    in_unit = (_pad_rows(num_classes, logit_itemsize) * logit_itemsize
               + _pad_rows(1, tgt_itemsize) * tgt_itemsize) * 128
    n128 = -(-num_pixels // 128)
    out_cost = 2 * 2 * _ROW_BYTES             # 2 outputs x double buffer x (1,128) f32

    per_frame = 2 * in_unit * n128 + out_cost  # whole frame per step, no accumulators
    if per_frame <= budget_bytes:
        # Small frames: fold G frames per block, keep the full (padded) pixel axis.
        p_units, n_k = n128, 1
        max_g = max(1, budget_bytes // per_frame)
        min_steps = 2 if n_frames >= 2 else 1  # keep >=2 grid steps for v7x's 2 cores
        g = 1
        for d in range(1, n_frames + 1):
            if n_frames % d == 0 and d <= max_g and n_frames // d >= min_steps:
                g = d
        est = g * per_frame + 2 * _ROW_BYTES   # + dummy accumulator scratch
    else:
        # Large frames: one frame per block, tile the pixel (reduction) axis.
        g = 1
        col_cost = 2 * in_unit + 2 * _ROW_BYTES   # double-buffered inputs + 2 f32 accs
        p_units = min(n128, max(1, (budget_bytes - out_cost) // col_cost))
        n_k = -(-n128 // p_units)
        est = col_cost * p_units + out_cost
    return g, p_units * 128, n_k * p_units * 128, n_k, est


def _criterion_kernel(x_ref, t_ref, ce_ref, dice_ref, ce_acc, pt_acc, *,
                      num_classes, num_pixels, pixel_tile, num_k, masked):
    k = pl.program_id(1)                       # pixel-tile (reduction) index

    x = x_ref[...].astype(jnp.float32)         # [G, C, PT] logits (upcast in-register)
    tgt = t_ref[...].astype(jnp.int32)         # [G, 1, PT] class labels (from int8)

    # ---- log-sum-exp over the class (sublane) axis ----------------------------------
    m = jnp.max(x, axis=1, keepdims=True)                       # [G, 1, PT]
    e = jnp.exp(x - m)                                           # [G, C, PT]
    s = jnp.sum(e, axis=1, keepdims=True)                        # [G, 1, PT]
    lse = m + jnp.log(s)                                         # [G, 1, PT]

    # One class mask, reused for target logit and target prob (no one-hot, no 2nd exp).
    cls_ids = jax.lax.broadcasted_iota(jnp.int32, x.shape, 1)
    is_tgt = cls_ids == tgt                                      # [G, C, PT]
    tgt_logit = jnp.sum(jnp.where(is_tgt, x, 0.0), axis=1, keepdims=True)
    e_tgt = jnp.sum(jnp.where(is_tgt, e, 0.0), axis=1, keepdims=True)

    ce = lse - tgt_logit                                         # per-pixel CE
    p_t = e_tgt * pl.reciprocal(s, approx=True)                  # softmax prob of target

    if masked:  # static: pixel axis was zero-padded in the wrapper
        pix = k * pixel_tile + jax.lax.broadcasted_iota(jnp.int32, ce.shape, 2)
        valid = pix < num_pixels
        ce = jnp.where(valid, ce, 0.0)
        p_t = jnp.where(valid, p_t, 0.0)

    def _finalize(ce_lanes, pt_lanes):
        ce_sum = jnp.sum(ce_lanes, axis=2, keepdims=True)        # [G, 1, 1]
        pt_sum = jnp.sum(pt_lanes, axis=2, keepdims=True)        # [G, 1, 1]
        ce_mean = ce_sum * (1.0 / float(num_pixels))
        # dice algebra: sum(probs*onehot) = sum(p_target); sum(probs+onehot) = 2P exact
        numerator = 2.0 * pt_sum * (1.0 / float(num_classes * num_pixels))
        denominator = 2.0 / float(num_classes)
        eps = 1e-6
        soft_iou = (numerator + eps) / (denominator + eps)
        dice = jnp.where(numerator > eps, 1.0 - soft_iou, 0.0)
        ce_ref[...] = jnp.broadcast_to(ce_mean, ce_ref.shape)
        dice_ref[...] = jnp.broadcast_to(dice, dice_ref.shape)

    if num_k == 1:
        # whole frame in one step: reduce and write directly (accumulators unused)
        _finalize(ce, p_t)
    else:
        @pl.when(k == 0)
        def _():
            ce_acc[...] = jnp.zeros_like(ce_acc)
            pt_acc[...] = jnp.zeros_like(pt_acc)

        ce_acc[...] += ce          # lane-partial sums; cross-lane reduce only at the end
        pt_acc[...] += p_t

        @pl.when(k == num_k - 1)
        def _():
            _finalize(ce_acc[...], pt_acc[...])


def set_criterion_losses(pred_masks, targets, weights=None):
    """pred_masks: [B, T, C, H, W] logits (any float dtype); targets: [B, T, H, W]
    integer class ids; weights: [B] per-sample scalars (or None -> ones)."""
    B, T, C, H, W = pred_masks.shape
    P = H * W
    n_frames = B * T

    logits = pred_masks.reshape(n_frames, C, P)          # native dtype, upcast in-kernel
    if C <= 127:
        tgt_dtype = jnp.int8                              # labels are pure HBM traffic
    elif C <= 32767:
        tgt_dtype = jnp.int16
    else:
        tgt_dtype = jnp.int32
    tgt = targets.reshape(n_frames, 1, P).astype(tgt_dtype)

    G, p_tile, P_pad, n_k, vmem_est = _plan_tiling(
        n_frames, C, P, jnp.dtype(logits.dtype).itemsize, jnp.dtype(tgt_dtype).itemsize)

    if P_pad != P:     # keep DMAs lane-dense for arbitrary H*W; padded pixels masked
        logits = jnp.pad(logits, ((0, 0), (0, 0), (0, P_pad - P)))
        tgt = jnp.pad(tgt, ((0, 0), (0, 0), (0, P_pad - P)))

    kernel = functools.partial(
        _criterion_kernel, num_classes=C, num_pixels=P, pixel_tile=p_tile,
        num_k=n_k, masked=(P_pad != P))

    # Accumulators only needed when the pixel axis is actually tiled (G == 1 then).
    acc_shape = (G, 1, p_tile) if n_k > 1 else (1, 1, 128)

    ce_out, dice_out = pl.pallas_call(
        kernel,
        out_shape=(
            jax.ShapeDtypeStruct((n_frames, 1, 128), jnp.float32),   # mean CE per frame
            jax.ShapeDtypeStruct((n_frames, 1, 128), jnp.float32),   # dice per frame
        ),
        grid=(n_frames // G, n_k),
        in_specs=[
            pl.BlockSpec((G, C, p_tile), lambda f, k: (f, 0, k)),    # logits block
            pl.BlockSpec((G, 1, p_tile), lambda f, k: (f, 0, k)),    # int8 labels block
        ],
        out_specs=(
            pl.BlockSpec((G, 1, 128), lambda f, k: (f, 0, 0)),
            pl.BlockSpec((G, 1, 128), lambda f, k: (f, 0, 0)),
        ),
        scratch_shapes=[pltpu.VMEM(acc_shape, jnp.float32),
                        pltpu.VMEM(acc_shape, jnp.float32)],
        compiler_params=pltpu.CompilerParams(
            dimension_semantics=("parallel", "arbitrary"),
            vmem_limit_bytes=int(min(32 << 20, max(16 << 20, 2 * vmem_est)))),
    )(logits, tgt)

    ce_frame = ce_out[:, 0, 0].reshape(B, T)      # unweighted per-frame mean CE
    dice_frame = dice_out[:, 0, 0].reshape(B, T)  # unweighted per-frame dice

    if weights is None:
        w = jnp.ones((B,), jnp.float32)
    else:
        w = jnp.asarray(weights, jnp.float32).reshape(B)

    # loss_bce  = (1/B) sum_i w_i * mean_{t,h,w} CE_i   = mean over (B,T) of w*CE_mean
    # loss_dice = (1/B) sum_i w_i * mean_t dice_{i,t}   = mean over (B,T) of w*dice
    return {"loss_bce": jnp.mean(ce_frame * w[:, None]),
            "loss_dice": jnp.mean(dice_frame * w[:, None])}


class SetCriterion:
    """JAX/Pallas re-implementation of the PyTorch SetCriterion forward pass."""

    def __init__(self, losses, weight_dict):
        self.losses = losses
        self.weight_dict = weight_dict

    def __call__(self, outputs, targets, obj2label, weights=None):
        # TODO(synk): check_target_validity's runtime assert has no in-kernel equivalent;
        # validate targets host-side before calling (as done in __main__ below).
        losses = {}
        main = set_criterion_losses(outputs["pred_masks"], targets, weights)
        for loss in self.losses:
            losses[f"loss_{loss}"] = main[f"loss_{loss}"]
        if "aux_outputs" in outputs:
            for idx, aux in enumerate(outputs["aux_outputs"]):
                aux_l = set_criterion_losses(aux["pred_masks"], targets, weights)
                for loss in self.losses:
                    losses[f"loss_{loss}_{idx}"] = aux_l[f"loss_{loss}"]
        return losses


# ------------------------- pure-JAX reference (for checking) ------------------------
def _reference_losses(pred_masks, targets, weights):
    B, T, C, H, W = pred_masks.shape
    x = pred_masks.astype(jnp.float32)
    onehot = jax.nn.one_hot(targets.astype(jnp.int32), C, axis=2, dtype=jnp.float32)
    logp = jax.nn.log_softmax(x, axis=2)
    ce = -jnp.sum(logp * onehot, axis=2)                               # [B, T, H, W]
    loss_bce = jnp.mean(jnp.mean(ce * weights[:, None, None, None], axis=(1, 2, 3)))
    probs = jax.nn.softmax(x, axis=2)
    pi = probs.reshape(B, T, -1)
    ti = onehot.reshape(B, T, -1)
    num = 2.0 * jnp.mean(pi * ti, axis=2)
    den = jnp.mean(pi + ti, axis=2)
    eps = 1e-6
    soft_iou = (num + eps) / (den + eps)
    dice = jnp.where(num > eps, 1.0 - soft_iou, 0.0)
    loss_dice = jnp.mean(jnp.mean(dice * weights[:, None], axis=1))
    return {"loss_bce": loss_bce, "loss_dice": loss_dice}


if __name__ == "__main__":
    criterion = SetCriterion(
        losses=["bce", "dice"], weight_dict={"loss_bce": 1.0, "loss_dice": 1.0})

    key = jax.random.PRNGKey(0)

    # ---- case 1: small frames (exercises frame folding) + an aux output ------------
    B, T, C, H, W = 2, 3, 4, 16, 16
    k1, k2, k3, k4 = jax.random.split(key, 4)
    pred_masks = jax.random.normal(k1, (B, T, C, H, W), dtype=jnp.float32)
    aux_pred_masks = jax.random.normal(k4, (B, T, C, H, W), dtype=jnp.float32)
    targets = jax.random.randint(k2, (B, T, H, W), 0, C, dtype=jnp.int32)
    weights = jax.random.uniform(k3, (B,), dtype=jnp.float32, minval=0.5, maxval=1.5)

    # host-side target validity check (mirrors check_target_validity)
    t_np = np.asarray(targets)
    assert t_np.min() >= 0 and t_np.max() < C, "target contains invalid class ids"

    outputs = {"pred_masks": pred_masks,
               "aux_outputs": [{"pred_masks": aux_pred_masks}]}
    losses = criterion(outputs, targets, None, weights=weights)
    losses = jax.tree_util.tree_map(jax.block_until_ready, losses)

    ref_main = _reference_losses(pred_masks, targets, weights)
    ref_aux = _reference_losses(aux_pred_masks, targets, weights)
    # bce path is exact f32; dice uses the EUP approx reciprocal -> slightly looser tol
    np.testing.assert_allclose(np.asarray(losses["loss_bce"]),
                               np.asarray(ref_main["loss_bce"]), rtol=1e-4, atol=1e-5)
    np.testing.assert_allclose(np.asarray(losses["loss_dice"]),
                               np.asarray(ref_main["loss_dice"]), rtol=2e-3, atol=2e-4)
    np.testing.assert_allclose(np.asarray(losses["loss_bce_0"]),
                               np.asarray(ref_aux["loss_bce"]), rtol=1e-4, atol=1e-5)
    np.testing.assert_allclose(np.asarray(losses["loss_dice_0"]),
                               np.asarray(ref_aux["loss_dice"]), rtol=2e-3, atol=2e-4)

    # ---- case 2: H*W not a multiple of 128 (exercises pad + in-kernel masking) -----
    B2, T2, C2, H2, W2 = 2, 2, 3, 10, 10
    j1, j2, j3 = jax.random.split(jax.random.PRNGKey(1), 3)
    pm2 = jax.random.normal(j1, (B2, T2, C2, H2, W2), dtype=jnp.float32)
    tg2 = jax.random.randint(j2, (B2, T2, H2, W2), 0, C2, dtype=jnp.int32)
    w2 = jax.random.uniform(j3, (B2,), dtype=jnp.float32, minval=0.5, maxval=1.5)
    losses2 = criterion({"pred_masks": pm2}, tg2, None, weights=w2)
    losses2 = jax.tree_util.tree_map(jax.block_until_ready, losses2)
    ref2 = _reference_losses(pm2, tg2, w2)
    np.testing.assert_allclose(np.asarray(losses2["loss_bce"]),
                               np.asarray(ref2["loss_bce"]), rtol=1e-4, atol=1e-5)
    np.testing.assert_allclose(np.asarray(losses2["loss_dice"]),
                               np.asarray(ref2["loss_dice"]), rtol=2e-3, atol=2e-4)

    print("KERNEL_OK")
</pallas_src>

<mosaic_0001>
module attributes {stable_mosaic.version = 11 : i64} {
  func.func @_criterion_kernel(%arg0: i32, %arg1: i32, %arg2: memref<3x4x256xf32, #tpu.memory_space<vmem>>, %arg3: memref<3x1x256xi8, #tpu.memory_space<vmem>>, %arg4: memref<3x1x128xf32, #tpu.memory_space<vmem>>, %arg5: memref<3x1x128xf32, #tpu.memory_space<vmem>>, %arg6: memref<1x1x128xf32, #tpu.memory_space<vmem>>, %arg7: memref<1x1x128xf32, #tpu.memory_space<vmem>>) attributes {dimension_semantics = [#tpu.dimension_semantics<parallel>, #tpu.dimension_semantics<arbitrary>], iteration_bounds = array<i64: 2, 1>, scalar_prefetch = 0 : i64, scratch_operands = 2 : i64, tpu.core_type = #tpu.core_type<tc>, window_params = [{transform_indices = @transform_0, window_bounds = array<i64: 3, 4, 256>}, {transform_indices = @transform_1, window_bounds = array<i64: 3, 1, 256>}, {transform_indices = @transform_2, window_bounds = array<i64: 3, 1, 128>}, {transform_indices = @transform_3, window_bounds = array<i64: 3, 1, 128>}]} {
    %c0 = arith.constant 0 : index
    %c0_0 = arith.constant 0 : index
    %c0_1 = arith.constant 0 : index
    %0 = vector.load %arg2[%c0, %c0_0, %c0_1] : memref<3x4x256xf32, #tpu.memory_space<vmem>>, vector<3x4x256xf32>
    %c0_2 = arith.constant 0 : index
    %c0_3 = arith.constant 0 : index
    %c0_4 = arith.constant 0 : index
    %1 = vector.load %arg3[%c0_2, %c0_3, %c0_4] : memref<3x1x256xi8, #tpu.memory_space<vmem>>, vector<3x1x256xi8>
    %2 = arith.extsi %1 : vector<3x1x256xi8> to vector<3x1x256xi32>
    %cst = arith.constant dense<0xFF800000> : vector<3x256xf32>
    %3 = vector.multi_reduction <maximumf>, %0, %cst [1] : vector<3x4x256xf32> to vector<3x256xf32>
    %4 = vector.shape_cast %3 : vector<3x256xf32> to vector<3x1x256xf32>
    %5 = vector.broadcast %4 : vector<3x1x256xf32> to vector<3x4x256xf32>
    %6 = arith.subf %0, %5 : vector<3x4x256xf32>
    %7 = math.exp %6 : vector<3x4x256xf32>
    %cst_5 = arith.constant dense<0.000000e+00> : vector<3x256xf32>
    %8 = vector.multi_reduction <add>, %7, %cst_5 [1] : vector<3x4x256xf32> to vector<3x256xf32>
    %9 = vector.shape_cast %8 : vector<3x256xf32> to vector<3x1x256xf32>
    %10 = math.log %9 : vector<3x1x256xf32>
    %11 = arith.addf %4, %10 : vector<3x1x256xf32>
    %12 = tpu.iota {dimensions = array<i32: 1>} : vector<3x4x256xi32>
    %13 = vector.broadcast %2 : vector<3x1x256xi32> to vector<3x4x256xi32>
    %14 = arith.cmpi eq, %12, %13 : vector<3x4x256xi32>
    %cst_6 = arith.constant 0.000000e+00 : f32
    %15 = vector.broadcast %cst_6 : f32 to vector<3x4x256xf32>
    %16 = arith.select %14, %0, %15 : vector<3x4x256xi1>, vector<3x4x256xf32>
    %cst_7 = arith.constant dense<0.000000e+00> : vector<3x256xf32>
    %17 = vector.multi_reduction <add>, %16, %cst_7 [1] : vector<3x4x256xf32> to vector<3x256xf32>
    %18 = vector.shape_cast %17 : vector<3x256xf32> to vector<3x1x256xf32>
    %cst_8 = arith.constant 0.000000e+00 : f32
    %19 = vector.broadcast %cst_8 : f32 to vector<3x4x256xf32>
    %20 = arith.select %14, %7, %19 : vector<3x4x256xi1>, vector<3x4x256xf32>
    %cst_9 = arith.constant dense<0.000000e+00> : vector<3x256xf32>
    %21 = vector.multi_reduction <add>, %20, %cst_9 [1] : vector<3x4x256xf32> to vector<3x256xf32>
    %22 = vector.shape_cast %21 : vector<3x256xf32> to vector<3x1x256xf32>
    %23 = arith.subf %11, %18 : vector<3x1x256xf32>
    %24 = tpu.reciprocal %9 {approx = true} : vector<3x1x256xf32> -> vector<3x1x256xf32>
    %25 = arith.mulf %22, %24 : vector<3x1x256xf32>
    %cst_10 = arith.constant dense<0.000000e+00> : vector<3x1xf32>
    %26 = vector.multi_reduction <add>, %23, %cst_10 [2] : vector<3x1x256xf32> to vector<3x1xf32>
    %27 = vector.shape_cast %26 : vector<3x1xf32> to vector<3x1x1xf32>
    %cst_11 = arith.constant dense<0.000000e+00> : vector<3x1xf32>
    %28 = vector.multi_reduction <add>, %25, %cst_11 [2] : vector<3x1x256xf32> to vector<3x1xf32>
    %29 = vector.shape_cast %28 : vector<3x1xf32> to vector<3x1x1xf32>
    %cst_12 = arith.constant 3.906250e-03 : f32
    %30 = vector.broadcast %cst_12 : f32 to vector<3x1x1xf32>
    %31 = arith.mulf %27, %30 : vector<3x1x1xf32>
    %cst_13 = arith.constant 2.000000e+00 : f32
    %32 = vector.broadcast %cst_13 : f32 to vector<3x1x1xf32>
    %33 = arith.mulf %32, %29 : vector<3x1x1xf32>
    %cst_14 = arith.constant 9.765625E-4 : f32
    %34 = vector.broadcast %cst_14 : f32 to vector<3x1x1xf32>
    %35 = arith.mulf %33, %34 : vector<3x1x1xf32>
    %cst_15 = arith.constant 9.99999997E-7 : f32
    %36 = vector.broadcast %cst_15 : f32 to vector<3x1x1xf32>
    %37 = arith.addf %35, %36 : vector<3x1x1xf32>
    %cst_16 = arith.constant 5.000010e-01 : f32
    %38 = vector.broadcast %cst_16 : f32 to vector<3x1x1xf32>
    %39 = arith.divf %37, %38 : vector<3x1x1xf32>
    %cst_17 = arith.constant 9.99999997E-7 : f32
    %40 = vector.broadcast %cst_17 : f32 to vector<3x1x1xf32>
    %41 = arith.cmpf ogt, %35, %40 : vector<3x1x1xf32>
    %cst_18 = arith.constant 1.000000e+00 : f32
    %42 = vector.broadcast %cst_18 : f32 to vector<3x1x1xf32>
    %43 = arith.subf %42, %39 : vector<3x1x1xf32>
    %cst_19 = arith.constant 0.000000e+00 : f32
    %44 = vector.broadcast %cst_19 : f32 to vector<3x1x1xf32>
    %45 = arith.select %41, %43, %44 : vector<3x1x1xi1>, vector<3x1x1xf32>
    %46 = vector.shape_cast %31 : vector<3x1x1xf32> to vector<3x1x1xf32>
    %47 = vector.broadcast %46 : vector<3x1x1xf32> to vector<3x1x128xf32>
    %c0_20 = arith.constant 0 : index
    %c0_21 = arith.constant 0 : index
    %c0_22 = arith.constant 0 : index
    %48 = vector.load %arg4[%c0_20, %c0_21, %c0_22] : memref<3x1x128xf32, #tpu.memory_space<vmem>>, vector<3x1x128xf32>
    tpu.vector_store %arg4[%c0_20, %c0_21, %c0_22], %47 {strides = array<i32>} : memref<3x1x128xf32, #tpu.memory_space<vmem>>, vector<3x1x128xf32>,
    %49 = vector.shape_cast %45 : vector<3x1x1xf32> to vector<3x1x1xf32>
    %50 = vector.broadcast %49 : vector<3x1x1xf32> to vector<3x1x128xf32>
    %c0_23 = arith.constant 0 : index
    %c0_24 = arith.constant 0 : index
    %c0_25 = arith.constant 0 : index
    %51 = vector.load %arg5[%c0_23, %c0_24, %c0_25] : memref<3x1x128xf32, #tpu.memory_space<vmem>>, vector<3x1x128xf32>
    tpu.vector_store %arg5[%c0_23, %c0_24, %c0_25], %50 {strides = array<i32>} : memref<3x1x128xf32, #tpu.memory_space<vmem>>, vector<3x1x128xf32>,
    return
  }
  func.func @transform_0(%arg0: i32, %arg1: i32) -> (i32, i32, i32) {
    %c0_i32 = arith.constant 0 : i32
    %c0_i32_0 = arith.constant 0 : i32
    return %arg0, %c0_i32, %arg1 : i32, i32, i32
  }
  func.func @transform_1(%arg0: i32, %arg1: i32) -> (i32, i32, i32) {
    %c0_i32 = arith.constant 0 : i32
    %c0_i32_0 = arith.constant 0 : i32
    return %arg0, %c0_i32, %arg1 : i32, i32, i32
  }
  func.func @transform_2(%arg0: i32, %arg1: i32) -> (i32, i32, i32) {
    %c0_i32 = arith.constant 0 : i32
    %c0_i32_0 = arith.constant 0 : i32
    %c0_i32_1 = arith.constant 0 : i32
    return %arg0, %c0_i32, %c0_i32_0 : i32, i32, i32
  }
  func.func @transform_3(%arg0: i32, %arg1: i32) -> (i32, i32, i32) {
    %c0_i32 = arith.constant 0 : i32
    %c0_i32_0 = arith.constant 0 : i32
    %c0_i32_1 = arith.constant 0 : i32
    return %arg0, %c0_i32, %c0_i32_0 : i32, i32, i32
  }
}

</mosaic_0001>

<bundles_post_ra>
// kernel: tpu_custom_call.1
= control target key start
LH: loop header
LB: loop body
LE: loop exit
PB: predicated region body
PF: predicated region fallthrough
CT: control target
= control target key end

     0   :  { %9 = vsyncpa [#allocation5], 0  ;;  %s1456_s0 = inlined_call_operand.hbm [shape: f32[6,4,256], index: 0, kind: input, shape index: {}]   ;;  %s1457_s1 = inlined_call_operand.vmem [shape: s8[6,1,256], index: 1, kind: input, shape index: {}]   ;;  %s1458_s2 = inlined_call_operand.hbm [shape: f32[6,1,128], index: 2, kind: output, shape index: {0}]   ;;  %s1459_s3 = inlined_call_operand.hbm [shape: f32[6,1,128], index: 3, kind: output, shape index: {1}]  }
   0x1   :  { %11 = vsyncpa [#allocation5 + $0x1], 0 }
   0x2   :  { %12 = vsyncpa [#allocation6], 0 }
   0x3   :  { %14 = vsyncpa [#allocation6 + $0x1], 0 }
   0x4   :  { %15 = vsyncpa [#allocation9], 0 }
   0x5   :  { %17 = vsyncpa [#allocation9 + $0x1], 0  ;;  %s1090_s12 = smov 0   ;;  %s1092_s13 = smov 0  }
   0x6   :  { %s1094_s14 = smov 0   ;;  %s1096_s15 = smov 0  }
   0x7   :  { %s1098_s16 = smov 0   ;;  %s1100_s17 = smov 0  }
   0x8 LB: > { %s795_s18 = sadd.s32 4294967295, %s1061_s17   ;;  %s796_s19 = sadd.s32 4294967294, %s1061_s17   ;;  %s1061_s17 = sphi %s1100_s17, %s23_s17   ;;  %s1057_s16 = sphi %s1098_s16, %s1482_s16   ;;  %s1053_s15 = sphi %s1096_s15, %s1481_s15   ;;  %s1049_s14 = sphi %s1094_s14, %s1480_s14   ;;  %s1045_s13 = sphi %s1092_s13, %s1479_s13   ;;  %s1041_s12 = sphi %s1090_s12, %s1478_s12  }
   0x9   : > { %s35_s20 = sadd.s32 1, %s1057_s16  ;;  %s44_s21 = sadd.s32 1, %s1049_s14 }
   0xa   : > { %p37_p0 = scmp.ge.s32.totalorder %s35_s20, 2  ;;  %p51_p1 = scmp.ne.s32.totalorder %s1049_s14, %s1045_s13 }
   0xb   : > { %p52_p2 = scmp.eq.s32.totalorder %s1061_s17, 0  ;;  %p57_p3 = scmp.ne.s32.totalorder %s1045_s13, %s1041_s12 }
   0xc   : > { %s1484_s20 = smov (%p37_p0, %s35_s20), 0  ;;  %p58_p5 = scmp.eq.s32.totalorder %s795_s18, 0 }
   0xd   : > { %p1131_p4 = por %p52_p2, %p51_p1  ;;  %s39_s23 = ssub.s32 %s1057_s16, %s1484_s20 }
   0xe   : > { %p109_p6 = scmp.eq.s32.totalorder %s795_s18, 1  ;;  %p42_p7 = scmp.eq.s32.totalorder %s39_s23, 0 }
   0xf   : > { %p1137_p8 = por %p58_p5, %p57_p3  ;;  %p115_p10 = scmp.eq.s32.totalorder %s796_s19, 1 }
  0x10   : > { %p1141_p9 = por %p109_p6, %p51_p1  ;;  %p836_p13 = scmp.lt.s32.totalorder %s1061_s17, 2 }
  0x11   : > { %s1146_s26 = scalar_select %p42_p7, %s1049_s14, %s44_s21  }
  0x12   : > { %p1148_p11 = por %p115_p10, %p57_p3  ;;  %s161_s28 = sand.u32 1, %s1049_s14  }
  0x13   : > { %s816_s29 = smul.u32 24, %s161_s28  ;;  %p1158_p0 = pnand %p836_p13, %p1131_p4 }
  0x14   : > { %s811_s30 = smul.u32 384, %s1057_s16  ;;  %p801_p1 = scmp.ge.s32.totalorder %s1061_s17, 1 }
  0x15   : > { %s165_s8 = scalar_lea.vmem [#allocation4], %s816_s29  ;;  %s162_s10 = scalar_lea.sflag [#allocation5], %s161_s28 }
  0x16   : > { %s174_s7 = scalar_lea.hbm %s1456_s0, %s811_s30  ;;  %s175_s9 = sshll.u32 %s165_s8, 4  ;;  %s176_s9 = int_to_ptr.vmem [resolvable:$true] %s175_s9 }
  0x17   : > { %p925_p2 = pneg %p1158_p0  ;;  %s936_s11 = scalar_lea.vmem %s176_s9, 384 }
  0x18   : > { %p937_p3 = scmp.ne.s32.totalorder %s176_s9, %s936_s11  ;;  %s1063_s18 = smov [#allocation4]  }
  0x19   : > { %s941_s19 = sshll.u32 %s1063_s18, 4  ;;  %s942_s19 = int_to_ptr.vmem [resolvable:$false] %s941_s19 }
  0x1a   : > { %p939_p5 = pnand %p937_p3, %p925_p2  ;;  %s943_s21 = scalar_lea.vmem %s942_s19, 768 }
  0x1b   : > { %p944_p4 = scmp.lt.s32.totalorder %s176_s9, %s942_s19  ;;  %p945_p7 = scmp.lt.s32.totalorder %s943_s21, %s936_s11 }
  0x1c   : > { %p940_p6 = pneg %p939_p5 }
  0x1d   : > { %p946_p10 = por %p945_p7, %p944_p4 }
  0x1f   : > { %p947_p13 = pnand %p946_p10, %p940_p6 }
  0x21   : > { %950 = shalt.err (!%p947_p13)
}
  0x22   : > { %s1064_s22 = smov 128   ;;  %s1065_s23 = smov 8  }
  0x23   : > { %828 = dma.hbm_to_vmem [thread:$0]  (!%p1158_p0), %s174_s7, 384, %s176_s9, %s162_s10, %s1064_s22, %s1064_s22, %s1065_s23  }
  0x24   : > { %p197_p12 = scmp.lt.s32.totalorder %s1061_s17, 3 }
  0x26   : > { %p198_p2 = pnand %p801_p1, %p197_p12 }
  0x27   : > { %s1174_s28 = sand.u32 (!%p198_p2), 1, %s1045_s13  }
  0x28   : > { %201 = sbr.rel (%p198_p2) target bundleno = 310 (0x136), region = 28  ;;  %s204_s30 = scalar_lea.sflag (!%p198_p2), [#allocation5], %s1174_s28 }
  0x29   : > { %s817_s29 = smul.u32 (!%p198_p2), 24, %s1174_s28 }
  0x2b   : > { %s207_s5 = scalar_lea.vmem (!%p198_p2), [#allocation4], %s817_s29 }
  0x2d   : > { %1028 = dma.done.wait (%p1137_p8), %s204_s30, 384  }
  0x2e   : > { %1030 = vsyncadd (%p1137_p8), %s204_s30, 4294966912  ;;  %s246_s4 = smul.u32 3, %s1053_s15  ;;  %vm277_vm0 = vcmask 1043456   ;;  %v1183_v0 = vld [vmem:[%s207_s5 + $0x10] sm:$0xff]  ;;  %v410_v1 = vlaneseq  ;;  %v1185_v2 = vld [vmem:[%s207_s5] sm:$0xff]  ;;  %s1066_s24 = smov [#allocation7]  }
  0x2f   : > { %v1189_v3 = vcombine.high %v1183_v0, %v1183_v0  ;;  %v306_v4 = vsel %vm277_vm0, %v1183_v0, -inf  ;;  %v1195_v5 = vcombine.high %v1185_v2, %v1185_v2  ;;  %v278_v6 = vsel %vm277_vm0, %v1185_v2, -inf  ;;  %v1208_v11 = vld [vmem:[%s207_s5 + $0x8] sm:$0xff]  ;;  %s818_s9 = smul.u32 3, %s1174_s28  ;;  %s955_s7 = sshll.u32 %s1066_s24, 4  ;;  %s956_s7 = int_to_ptr.vmem [resolvable:$false] %s955_s7 }
  0x30   : > { %p248_p0 = scmp.lt.s32.totalorder %s246_s4, 5  ;;  %v307_v7 = vrot.slane %v306_v4, 4  ;;  %v279_v8 = vrot.slane %v278_v6, 4  ;;  %v1210_v14 = vshrl.u32 %v410_v1, 7  ;;  %v1215_v20 = vcombine.high %v1208_v11, %v1208_v11  ;;  %s809_s19 = smul.u32 48, %s1053_s15 }
  0x31   : > { %v313_v9 = vsel %vm277_vm0, %v1189_v3, -inf  ;;  %v285_v10 = vsel %vm277_vm0, %v1195_v5, -inf  ;;  %v292_v31 = vsel %vm277_vm0, %v1208_v11, -inf  ;;  %s1361_s10 = scalar_lea.vmem [#allocation8], %s818_s9  ;;  %s236_s11 = scalar_lea.vmem [#allocation7], %s818_s9 }
  0x32   : > { %s1486_s4 = smov (!%p248_p0, %s246_s4), 5  ;;  %v308_v12 = vmax.f32 %v306_v4, %v307_v7  ;;  %v314_v13 = vrot.slane %v313_v9, 4  ;;  %v280_v16 = vmax.f32 %v278_v6, %v279_v8  ;;  %v286_v17 = vrot.slane %v285_v10, 4  ;;  %s648_s18 = sshll.u32 %s236_s11, 4  ;;  %s1367_s18 = int_to_ptr.vmem [resolvable:$true] %s648_s18 }
  0x33   : > { %s802_s6 = sshll.u32 %s1486_s4, 1  ;;  %v1218_v25 = vsub.s32 0, %v1210_v14  ;;  %v299_v32 = vsel %vm277_vm0, %v1215_v20, -inf  ;;  %v293_v35 = vrot.slane %v292_v31, 4  ;;  %v418_v39 = vsub.s32 4, %v1210_v14  ;;  %s664_s21 = sshll.u32 %s1361_s10, 4  ;;  %s1374_s21 = int_to_ptr.vmem [resolvable:$true] %s664_s21 }
  0x34   : > { %s1202_s8 = scalar_lea.vmem %s1457_s1, %s802_s6  ;;  %v309_v18 = vrot.slane %v308_v12, 2  ;;  %v315_v19 = vmax.f32 %v313_v9, %v314_v13  ;;  %v281_v21 = vrot.slane %v280_v16, 2  ;;  %v287_v22 = vmax.f32 %v285_v10, %v286_v17  ;;  %s1372_s29 = scalar_lea.hbm %s1458_s2, %s809_s19 }
  0x35   : > { %v813_v15 = vld [vmem:[%s1202_s8] sm:$0xf]   ;;  %v300_v36 = vrot.slane %v299_v32, 4  ;;  %v294_v43 = vmax.f32 %v292_v31, %v293_v35  ;;  %v264_v49 = vld [vmem:[%s1202_s8 + $0x4] sm:$0x3]  ;;  %s1379_s5 = scalar_lea.hbm %s1459_s3, %s809_s19  ;;  %s630_s4 = scalar_lea.sflag [#allocation6], %s1174_s28 }
  0x36   : > { %v310_v23 = vmax.f32 %v308_v12, %v309_v18  ;;  %v316_v24 = vrot.slane %v315_v19, 2  ;;  %v814_v26 = vunpack.c.0.s8 %v813_v15  ;;  %v282_v27 = vmax.f32 %v280_v16, %v281_v21  ;;  %s951_s6 = scalar_lea.vmem %s1367_s18, 48  ;;  %s957_s8 = scalar_lea.vmem %s956_s7, 96 }
  0x37   : > { %v288_v28 = vrot.slane %v287_v22, 2  ;;  %v301_v44 = vmax.f32 %v299_v32, %v300_v36  ;;  %v295_v47 = vrot.slane %v294_v43, 2  ;;  %v815_v53 = vunpack.c.1.s8 %v813_v15  ;;  %p952_p8 = scmp.ne.s32.totalorder %s1367_s18, %s951_s6  ;;  %p958_p3 = scmp.lt.s32.totalorder %s1367_s18, %s956_s7 }
  0x38   : > { %v311_v29 = vrot.slane %v310_v23, 1  ;;  %v317_v30 = vmax.f32 %v315_v19, %v316_v24  ;;  %v283_v33 = vrot.slane %v282_v27, 1  ;;  %v415_v40 = vrot.slane %v814_v26, %v1218_v25  ;;  %p959_p5 = scmp.lt.s32.totalorder %s957_s8, %s951_s6 }
  0x39   : > { %v289_v34 = vmax.f32 %v287_v22, %v288_v28  ;;  %v302_v48 = vrot.slane %v301_v44, 2  ;;  %v419_v51 = vrot.slane %v814_v26, %v418_v39  ;;  %v296_v55 = vmax.f32 %v294_v43, %v295_v47  ;;  %p953_p12 = pnand %p952_p8, %p1141_p9 }
  0x3a   : > { %v1224_v37 = vmax.f32 %v310_v23, %v311_v29  ;;  %v318_v38 = vrot.slane %v317_v30, 1  ;;  %v1228_v41 = vmax.f32 %v282_v27, %v283_v33  ;;  %v439_v52 = vrot.slane %v415_v40, %v1218_v25  ;;  %p960_p6 = por %p959_p5, %p958_p3 }
  0x3b   : > { %v290_v42 = vrot.slane %v289_v34, 1  ;;  %v303_v56 = vmax.f32 %v301_v44, %v302_v48  ;;  %v267_v58 = vunpack.c.0.s8 %v264_v49  ;;  %v297_v60 = vrot.slane %v296_v55, 1  ;;  %p954_p1 = pneg %p953_p12 }
  0x3c   : > { %v1230_v45 = vmax.f32 %v317_v30, %v318_v38  ;;  %v443_v63 = vrot.slane %v419_v51, %v1218_v25  ;;  %vm1244_vm1 = vcmp.eq.s32.totalorder %v1210_v14, %v439_v52  ;;  %v423_v4 = vrot.slane %v815_v53, %v1218_v25 }
  0x3d   : > { %v1232_v46 = vmax.f32 %v289_v34, %v290_v42  ;;  %v304_v61 = vrot.slane %v303_v56, 1  ;;  %v1249_v7 = vmax.f32 %v296_v55, %v297_v60  ;;  %v466_v9 = vsel %vm1244_vm1, %v1185_v2, 0.0  ;;  %p961_p4 = pnand %p960_p6, %p954_p1 }
  0x3e   : > { %v328_v50 = vcombine.low %v1224_v37, %v1230_v45  ;;  %v427_v12 = vrot.slane %v815_v53, %v418_v39  ;;  %vm1259_vm2 = vcmp.eq.s32.totalorder %v1210_v14, %v443_v63  ;;  %v447_v15 = vrot.slane %v423_v4, %v1218_v25 }
  0x3f   : > { %v326_v54 = vcombine.low %v1228_v41, %v1232_v46  ;;  %v1251_v8 = vmax.f32 %v303_v56, %v304_v61  ;;  %v472_v16 = vsel %vm277_vm0, %v466_v9, 0.0  ;;  %v431_v17 = vrot.slane %v267_v58, %v1218_v25 }
  0x40   : > { %v334_v57 = vsub.f32 %v1183_v0, %v328_v50  ;;  %v435_v18 = vrot.slane %v267_v58, %v418_v39  ;;  %v451_v21 = vrot.slane %v427_v12, %v1218_v25  ;;  %v473_v22 = vrot.slane %v472_v16, 4 }
  0x41   : > { %v332_v59 = vsub.f32 %v1185_v2, %v326_v54  ;;  %v327_v10 = vcombine.low %v1249_v7, %v1251_v8  ;;  %v467_v2 = vsel %vm1259_vm2, %v1195_v5, 0.0  ;;  %vm1272_vm3 = vcmp.eq.s32.totalorder %v1210_v14, %v447_v15 }
  0x42   : > { %v339_v62 = vmul.f32 1.442695, %v334_v57  ;;  %v479_v24 = vsel %vm277_vm0, %v467_v2, 0.0  ;;  %v455_v26 = vrot.slane %v431_v17, %v1218_v25  ;;  %v468_v27 = vsel %vm1272_vm3, %v1208_v11, 0.0 }
  0x43   : > { %v335_v6 = vmul.f32 1.442695, %v332_v59  ;;  %v333_v19 = vsub.f32 %v1208_v11, %v327_v10  ;;  %v459_v5 = vrot.slane %v435_v18, %v1218_v25  ;;  %vm1283_vm4 = vcmp.eq.s32.totalorder %v1210_v14, %v451_v21 }
  0x44   : > { %893 = vpow2.f32 %v339_v62  ;;  %v1287_v30 = vadd.f32 %v473_v22, %v472_v16  ;;  %v480_v31 = vrot.slane %v479_v24, 4  ;;  %v469_v32 = vsel %vm1283_vm4, %v1215_v20, 0.0 }
  0x45   : > { %895 = vpow2.f32 %v335_v6  ;;  %v337_v28 = vmul.f32 1.442695, %v333_v19  ;;  %v1293_v33 = vsel %vm277_vm0, %v468_v27, 0.0  ;;  %vm1296_vm5 = vcmp.eq.s32.totalorder %v1210_v14, %v455_v26 }
  0x46   : > { %vm1301_vm6 = vcmp.eq.s32.totalorder %v1210_v14, %v459_v5  ;;  %v475_v35 = vrot.slane %v1287_v30, 2  ;;  %v1306_v36 = vadd.f32 %v480_v31, %v479_v24  ;;  %v487_v20 = vrot.slane %v1293_v33, 4 }
  0x47   : > { %897 = vpow2.f32 %v337_v28  ;;  %v1310_v38 = vsel %vm277_vm0, %v469_v32, 0.0  ;;  %v470_v43 = vsel %vm1296_vm5, %v1183_v0, 0.0  ;;  %v471_v60 = vsel %vm1301_vm6, %v1189_v3, 0.0 }
  0x48   : > { %v500_v12 = vsel %vm277_vm0, %v470_v43, 0.0  ;;  %v507_v1 = vsel %vm277_vm0, %v471_v60, 0.0 }
  0x49   : > { %v501_v28 = vrot.slane %v500_v12, 4 }
  0x51   : > { %v894_v34 = vpop.eup %893 }
  0x52   : > { %v896_v39 = vpop.eup %895  ;;  %v346_v40 = vcombine.high %v894_v34, %v894_v34  ;;  %v378_v42 = vsel %vm277_vm0, %v894_v34, 0.0  ;;  %v518_v14 = vsel %vm1296_vm5, %v894_v34, 0.0 }
  0x53   : > { %v379_v44 = vrot.slane %v378_v42, 4  ;;  %v548_v47 = vsel %vm277_vm0, %v518_v14, 0.0  ;;  %v344_v48 = vcombine.high %v896_v39, %v896_v39  ;;  %v350_v49 = vsel %vm277_vm0, %v896_v39, 0.0 }
  0x54   : > { %v385_v50 = vsel %vm277_vm0, %v346_v40, 0.0  ;;  %v519_v51 = vsel %vm1301_vm6, %v346_v40, 0.0  ;;  %v549_v52 = vrot.slane %v548_v47, 4  ;;  %v351_v53 = vrot.slane %v350_v49, 4  ;;  %v898_v31 = vpop.eup %897 }
  0x55   : > { %v380_v54 = vadd.f32 %v379_v44, %v378_v42  ;;  %v386_v55 = vrot.slane %v385_v50, 4  ;;  %v555_v56 = vsel %vm277_vm0, %v519_v51, 0.0  ;;  %v357_v57 = vsel %vm277_vm0, %v344_v48, 0.0 }
  0x56   : > { %v556_v0 = vrot.slane %v555_v56, 4  ;;  %v352_v58 = vadd.f32 %v351_v53, %v350_v49  ;;  %v358_v59 = vrot.slane %v357_v57, 4  ;;  %v514_v63 = vsel %vm1244_vm1, %v896_v39, 0.0 }
  0x57   : > { %v381_v61 = vrot.slane %v380_v54, 2  ;;  %v387_v62 = vadd.f32 %v386_v55, %v385_v50  ;;  %v515_v4 = vsel %vm1259_vm2, %v344_v48, 0.0  ;;  %v550_v6 = vadd.f32 %v549_v52, %v548_v47 }
  0x58   : > { %v353_v9 = vrot.slane %v352_v58, 2  ;;  %v359_v10 = vadd.f32 %v358_v59, %v357_v57  ;;  %v520_v17 = vsel %vm277_vm0, %v514_v63, 0.0  ;;  %v527_v2 = vsel %vm277_vm0, %v515_v4, 0.0 }
  0x59   : > { %v382_v15 = vadd.f32 %v381_v61, %v380_v54  ;;  %v388_v16 = vrot.slane %v387_v62, 2  ;;  %v557_v3 = vadd.f32 %v556_v0, %v555_v56  ;;  %v521_v13 = vrot.slane %v520_v17, 4 }
  0x5a   : > { %v354_v18 = vadd.f32 %v353_v9, %v352_v58  ;;  %v360_v19 = vrot.slane %v359_v10, 2  ;;  %v528_v24 = vrot.slane %v527_v2, 4  ;;  %v551_v26 = vrot.slane %v550_v6, 2 }
  0x5b   : > { %v383_v21 = vrot.slane %v382_v15, 1  ;;  %v389_v22 = vadd.f32 %v388_v16, %v387_v62  ;;  %v522_v25 = vadd.f32 %v521_v13, %v520_v17  ;;  %v558_v39 = vrot.slane %v557_v3, 2 }
  0x5c   : > { %v355_v27 = vrot.slane %v354_v18, 1  ;;  %v361_v5 = vadd.f32 %v360_v19, %v359_v10  ;;  %v529_v34 = vadd.f32 %v528_v24, %v527_v2  ;;  %v508_v14 = vrot.slane %v507_v1, 4 }
  0x5d   : > { %v384_v32 = vadd.f32 %v383_v21, %v382_v15  ;;  %v390_v11 = vrot.slane %v389_v22, 1  ;;  %v523_v44 = vrot.slane %v522_v25, 2  ;;  %v345_v49 = vcombine.high %v898_v31, %v898_v31 }
  0x5e   : > { %v356_v40 = vadd.f32 %v355_v27, %v354_v18  ;;  %v362_v42 = vrot.slane %v361_v5, 1  ;;  %v530_v47 = vrot.slane %v529_v34, 2  ;;  %v502_v50 = vadd.f32 %v501_v28, %v500_v12 }
  0x5f   : > { %v391_v43 = vadd.f32 %v390_v11, %v389_v22  ;;  %899 = vrcp.f32 %v384_v32  ;;  %v552_v51 = vadd.f32 %v551_v26, %v550_v6  ;;  %v524_v52 = vadd.f32 %v523_v44, %v522_v25 }
  0x60   : > { %v363_v48 = vadd.f32 %v362_v42, %v361_v5  ;;  %901 = vrcp.f32 %v356_v40  ;;  %v364_v53 = vsel %vm277_vm0, %v898_v31, 0.0  ;;  %v371_v55 = vsel %vm277_vm0, %v345_v49, 0.0 }
  0x61   : > { %903 = vrcp.f32 %v391_v43  ;;  %v365_v54 = vrot.slane %v364_v53, 4  ;;  %v516_v56 = vsel %vm1272_vm3, %v898_v31, 0.0  ;;  %v559_v57 = vadd.f32 %v558_v39, %v557_v3 }
  0x62   : > { %905 = vrcp.f32 %v363_v48  ;;  %v531_v0 = vadd.f32 %v530_v47, %v529_v34  ;;  %v372_v58 = vrot.slane %v371_v55, 4  ;;  %v517_v59 = vsel %vm1283_vm4, %v345_v49, 0.0 }
  0x63   : > { %v366_v60 = vadd.f32 %v365_v54, %v364_v53  ;;  %v534_v61 = vsel %vm277_vm0, %v516_v56, 0.0  ;;  %v541_v62 = vsel %vm277_vm0, %v517_v59, 0.0  ;;  %907 = vlog2.f32 %v356_v40 }
  0x64   : > { %v553_v63 = vrot.slane %v552_v51, 1  ;;  %v373_v4 = vadd.f32 %v372_v58, %v371_v55  ;;  %v535_v6 = vrot.slane %v534_v61, 4  ;;  %v509_v9 = vadd.f32 %v508_v14, %v507_v1 }
  0x65   : > { %v525_v10 = vrot.slane %v524_v52, 1  ;;  %v367_v12 = vrot.slane %v366_v60, 2  ;;  %v542_v23 = vrot.slane %v541_v62, 4  ;;  %909 = vlog2.f32 %v363_v48 }
  0x66   : > { %v560_v15 = vrot.slane %v559_v57, 1  ;;  %v374_v16 = vrot.slane %v373_v4, 2  ;;  %v482_v17 = vrot.slane %v1306_v36, 2  ;;  %911 = vlog2.f32 %v384_v32 }
  0x67   : > { %v532_v29 = vrot.slane %v531_v0, 1  ;;  %v368_v2 = vadd.f32 %v367_v12, %v366_v60  ;;  %v536_v3 = vadd.f32 %v535_v6, %v534_v61  ;;  %913 = vlog2.f32 %v391_v43 }
  0x68   : > { %v554_v18 = vadd.f32 %v553_v63, %v552_v51  ;;  %v375_v19 = vadd.f32 %v374_v16, %v373_v4  ;;  %v543_v21 = vadd.f32 %v542_v23, %v541_v62  ;;  %v503_v22 = vrot.slane %v502_v50, 2 }
  0x69   : > { %v526_v13 = vadd.f32 %v525_v10, %v524_v52  ;;  %v369_v24 = vrot.slane %v368_v2, 1  ;;  %v476_v1 = vadd.f32 %v475_v35, %v1287_v30  ;;  %v510_v26 = vrot.slane %v509_v9, 2 }
  0x6a   : > { %v561_v27 = vadd.f32 %v560_v15, %v559_v57  ;;  %v376_v5 = vrot.slane %v375_v19, 1  ;;  %v488_v28 = vadd.f32 %v487_v20, %v1293_v33  ;;  %v494_v31 = vrot.slane %v1310_v38, 4 }
  0x6b   : > { %v533_v11 = vadd.f32 %v532_v29, %v531_v0  ;;  %v370_v25 = vadd.f32 %v369_v24, %v368_v2  ;;  %v537_v34 = vrot.slane %v536_v3, 2  ;;  %v483_v39 = vadd.f32 %v482_v17, %v1306_v36 }
  0x6c   : > { %v900_v32 = vpop.eup %899  ;;  %v377_v14 = vadd.f32 %v376_v5, %v375_v19  ;;  %v544_v43 = vrot.slane %v543_v21, 2  ;;  %v504_v30 = vadd.f32 %v503_v22, %v502_v50  ;;  %v477_v47 = vrot.slane %v476_v1, 1 }
  0x6d   : > { %v902_v40 = vpop.eup %901  ;;  %v578_v42 = vmul.f32 %v900_v32, %v554_v18  ;;  %915 = vrcp.f32 %v370_v25  ;;  %v511_v48 = vadd.f32 %v510_v26, %v509_v9  ;;  %v489_v20 = vrot.slane %v488_v28, 2 }
  0x6e   : > { %v904_v35 = vpop.eup %903  ;;  %v574_v44 = vmul.f32 %v902_v40, %v526_v13  ;;  %917 = vrcp.f32 %v377_v14  ;;  %v495_v51 = vadd.f32 %v494_v31, %v1310_v38  ;;  %v538_v53 = vadd.f32 %v537_v34, %v536_v3 }
  0x6f   : > { %v906_v49 = vpop.eup %905  ;;  %v579_v33 = vmul.f32 %v904_v35, %v561_v27  ;;  %v484_v54 = vrot.slane %v483_v39, 1  ;;  %919 = vlog2.f32 %v370_v25  ;;  %v545_v56 = vadd.f32 %v544_v43, %v543_v21 }
  0x70   : > { %v575_v52 = vmul.f32 %v906_v49, %v533_v11  ;;  %v908_v36 = vpop.eup %907  ;;  %921 = vlog2.f32 %v377_v14  ;;  %v505_v50 = vrot.slane %v504_v30, 1  ;;  %v478_v58 = vadd.f32 %v477_v47, %v476_v1 }
  0x71   : > { %v595_v55 = vadd.f32 %v579_v33, %v578_v42  ;;  %v393_v0 = vmul.f32 0.6931472, %v908_v36  ;;  %v512_v59 = vrot.slane %v511_v48, 1  ;;  %v496_v61 = vrot.slane %v495_v51, 2 }
  0x72   : > { %v589_v57 = vadd.f32 %v575_v52, %v574_v44  ;;  %v910_v60 = vpop.eup %909  ;;  %v539_v63 = vrot.slane %v538_v53, 1  ;;  %v485_v6 = vadd.f32 %v484_v54, %v483_v39  ;;  %v546_v10 = vrot.slane %v545_v56, 1 }
  0x73   : > { %596 = vadd.xlane.f32.xlu1 %v595_v55  ;;  %v912_v62 = vpop.eup %911  ;;  %v395_v38 = vmul.f32 0.6931472, %v910_v60  ;;  %v404_v4 = vadd.f32 %v393_v0, %v1228_v41  ;;  %v490_v12 = vadd.f32 %v489_v20, %v488_v28  ;;  %v506_v15 = vadd.f32 %v505_v50, %v504_v30 }
  0x74   : > { %590 = vadd.xlane.f32.xlu0 %v589_v57  ;;  %v914_v9 = vpop.eup %913  ;;  %v401_v23 = vmul.f32 0.6931472, %v912_v62  ;;  %v513_v2 = vadd.f32 %v512_v59, %v511_v48  ;;  %v497_v3 = vadd.f32 %v496_v61, %v495_v51  ;;  %v540_v19 = vadd.f32 %v539_v63, %v538_v53 }
  0x75   : > { %v405_v16 = vadd.f32 %v395_v38, %v1232_v46  ;;  %v562_v17 = vsub.f32 %v404_v4, %v478_v58  ;;  %v403_v29 = vmul.f32 0.6931472, %v914_v9  ;;  %v547_v13 = vadd.f32 %v546_v10, %v545_v56 }
  0x76   : > { %v408_v18 = vadd.f32 %v401_v23, %v1224_v37  ;;  %v491_v1 = vrot.slane %v490_v12, 1  ;;  %v498_v5 = vrot.slane %v497_v3, 1 }
  0x77   : > { %v563_v21 = vsub.f32 %v405_v16, %v485_v6  ;;  %v409_v22 = vadd.f32 %v403_v29, %v1230_v45 }
  0x78   : > { %v566_v41 = vsub.f32 %v408_v18, %v506_v15  ;;  %v492_v37 = vadd.f32 %v491_v1, %v490_v12  ;;  %v499_v45 = vadd.f32 %v498_v5, %v497_v3 }
  0x79   : > { %v580_v24 = vadd.f32 %v563_v21, %v562_v17  ;;  %v567_v26 = vsub.f32 %v409_v22, %v513_v2 }
  0x7a   : > { %v916_v27 = vpop.eup %915 }
  0x7b   : > { %v918_v28 = vpop.eup %917  ;;  %v576_v31 = vmul.f32 %v916_v27, %v540_v19  ;;  %581 = vadd.xlane.f32.xlu1 %v580_v24  ;;  %v586_v46 = vadd.f32 %v567_v26, %v566_v41 }
  0x7c   : > { %v920_v32 = vpop.eup %919  ;;  %v577_v11 = vmul.f32 %v918_v28, %v547_v13 }
  0x7d   : > { %v922_v25 = vpop.eup %921  ;;  %v397_v34 = vmul.f32 0.6931472, %v920_v32 }
  0x7e   : > { %v592_v39 = vadd.f32 %v577_v11, %v576_v31  ;;  %v399_v40 = vmul.f32 0.6931472, %v922_v25 }
  0x7f   : > { %v406_v42 = vadd.f32 %v397_v34, %v1249_v7  ;;  %587 = vadd.xlane.f32.xlu1 %v586_v46 }
  0x80   : > { %593 = vadd.xlane.f32.xlu0 %v592_v39  ;;  %v407_v14 = vadd.f32 %v399_v40, %v1251_v8 }
  0x81   : > { %v564_v43 = vsub.f32 %v406_v42, %v492_v37 }
  0x82   : > { %v565_v30 = vsub.f32 %v407_v14, %v499_v45 }
  0x84   : > { %v583_v35 = vadd.f32 %v565_v30, %v564_v43 }
  0x86   : > { %584 = vadd.xlane.f32.xlu0 %v583_v35 }
  0xfc   : > { %v597_v44 = vpop.xlane.xlu1 %596 }
  0xfd   : > { %v603_v47 = vmul.f32 2.0, %v597_v44  ;;  %v591_v48 = vpop.xlane.xlu0 %590 }
  0xfe   : > { %v601_v49 = vmul.f32 2.0, %v591_v48 }
  0xff   : > { %v606_v33 = vmul.f32 0.0009765625, %v603_v47 }
 0x100   : > { %v604_v20 = vmul.f32 0.0009765625, %v601_v49 }
 0x101   : > { %v609_v51 = vadd.f32 1e-06, %v606_v33  ;;  %vm616_vm7 = vcmp.gt.f32.partialorder %v606_v33, 1e-06 }
 0x102   : > { %v607_v52 = vadd.f32 1e-06, %v604_v20  ;;  %vm614_vm8 = vcmp.gt.f32.partialorder %v604_v20, 1e-06 }
 0x103   : > { %v613_v53 = vmul.f32 1.999996, %v609_v51 }
 0x104   : > { %v611_v7 = vmul.f32 1.999996, %v607_v52  ;;  %v582_v36 = vpop.xlane.xlu1 %581 }
 0x105   : > { %v619_v54 = vsub.f32 1.0, %v613_v53  ;;  %v598_v8 = vmul.f32 0.00390625, %v582_v36 }
 0x106   : > { %v617_v55 = vsub.f32 1.0, %v611_v7 }
 0x107   : > { %v622_v56 = vsel %vm616_vm7, %v619_v54, 0.0  ;;  %623 = vst [vmem:[%s236_s11] sm:$0x1] %v598_v8 }
 0x108   : > { %628 = vst [vmem:[%s1361_s10 + $0x2] sm:$0x1] %v622_v56  ;;  %v620_v50 = vsel %vm614_vm8, %v617_v55, 0.0  ;;  %v588_v57 = vpop.xlane.xlu1 %587 }
 0x109   : > { %626 = vst [vmem:[%s1361_s10] sm:$0x1] %v620_v50  ;;  %v594_v0 = vpop.xlane.xlu0 %593  ;;  %v600_v58 = vmul.f32 0.00390625, %v588_v57 }
 0x10a   : > { %v602_v59 = vmul.f32 2.0, %v594_v0 }
 0x10b   : > { %625 = vst [vmem:[%s236_s11 + $0x2] sm:$0x1] %v600_v58 }
 0x10c   : > { %v605_v60 = vmul.f32 0.0009765625, %v602_v59 }
 0x10e   : > { %v608_v61 = vadd.f32 1e-06, %v605_v60  ;;  %vm615_vm9 = vcmp.gt.f32.partialorder %v605_v60, 1e-06 }
 0x10f   : > { %v585_v62 = vpop.xlane.xlu0 %584 }
 0x110   : > { %v612_v63 = vmul.f32 1.999996, %v608_v61  ;;  %v599_v38 = vmul.f32 0.00390625, %v585_v62 }
 0x112   : > { %v618_v4 = vsub.f32 1.0, %v612_v63  ;;  %624 = vst [vmem:[%s236_s11 + $0x1] sm:$0x1] %v599_v38 }
 0x113   : > { %964 = shalt.err (!%p961_p4)
}
 0x114   : > { %s965_s9 = scalar_lea.hbm %s1372_s29, 48  ;;  %s969_s22 = scalar_lea.hbm %s1458_s2, 96 }
 0x115   : > { %p966_p7 = scmp.ne.s32.totalorder %s1372_s29, %s965_s9  ;;  %p970_p2 = scmp.lt.s32.totalorder %s1372_s29, %s1458_s2 }
 0x116   : > { %p971_p0 = scmp.lt.s32.totalorder %s969_s22, %s965_s9 }
 0x117   : > { %p967_p10 = pnand %p966_p7, %p1141_p9 }
 0x118   : > { %p972_p8 = por %p971_p0, %p970_p2 }
 0x119   : > { %p968_p13 = pneg %p967_p10 }
 0x11b   : > { %p973_p12 = pnand %p972_p8, %p968_p13 }
 0x11d   : > { %976 = shalt.err (!%p973_p12)
}
 0x11e   : > { %s1067_s30 = smov 16   ;;  %s1068_s6 = smov 1   ;;  %v621_v6 = vsel %vm615_vm9, %v618_v4, 0.0 }
 0x11f   : > { %821 = dma.vmem_to_hbm [thread:$0]  (%p1141_p9), %s1367_s18, 48, %s1372_s29, %s630_s4, %s1067_s30, %s1067_s30, %s1068_s6  }
 0x120   : > { %627 = vst [vmem:[%s1361_s10 + $0x1] sm:$0x1] %v621_v6  ;;  %s635_s24 = scalar_lea.sflag [#allocation9], %s1174_s28  ;;  %s977_s7 = scalar_lea.vmem %s1374_s21, 48 }
 0x121   : > { %p978_p1 = scmp.ne.s32.totalorder %s1374_s21, %s977_s7  ;;  %s1069_s8 = smov [#allocation8]  }
 0x122   : > { %s981_s9 = sshll.u32 %s1069_s8, 4  ;;  %s982_s9 = int_to_ptr.vmem [resolvable:$false] %s981_s9 }
 0x123   : > { %p979_p3 = pnand %p978_p1, %p1141_p9  ;;  %s983_s11 = scalar_lea.vmem %s982_s9, 96 }
 0x124   : > { %p984_p6 = scmp.lt.s32.totalorder %s1374_s21, %s982_s9  ;;  %p985_p4 = scmp.lt.s32.totalorder %s983_s11, %s977_s7 }
 0x125   : > { %p980_p5 = pneg %p979_p3 }
 0x126   : > { %p986_p7 = por %p985_p4, %p984_p6 }
 0x128   : > { %p987_p10 = pnand %p986_p7, %p980_p5 }
 0x12a   : > { %990 = shalt.err (!%p987_p10)
}
 0x12b   : > { %s991_s10 = scalar_lea.hbm %s1379_s5, 48  ;;  %s995_s29 = scalar_lea.hbm %s1459_s3, 96 }
 0x12c   : > { %p992_p13 = scmp.ne.s32.totalorder %s1379_s5, %s991_s10  ;;  %p996_p8 = scmp.lt.s32.totalorder %s1379_s5, %s1459_s3 }
 0x12d   : > { %p997_p12 = scmp.lt.s32.totalorder %s995_s29, %s991_s10 }
 0x12e   : > { %p993_p2 = pnand %p992_p13, %p1141_p9 }
 0x12f   : > { %p998_p1 = por %p997_p12, %p996_p8 }
 0x130   : > { %p994_p0 = pneg %p993_p2 }
 0x132   : > { %p999_p3 = pnand %p998_p1, %p994_p0 }
 0x134   : > { %1002 = shalt.err (!%p999_p3)
}
 0x135   : > { %822 = dma.vmem_to_hbm [thread:$0]  (%p1141_p9), %s1374_s21, 48, %s1379_s5, %s635_s24, %s1067_s30, %s1067_s30, %s1068_s6  }
 0x136 PF: > { %s679_s22 = sand.u32 1, %s1041_s12   ;;  %p1477_p5 = scmp.ge.s32.totalorder %s1061_s17, 2 }
 0x137   : > { %s680_s23 = scalar_lea.sflag [#allocation6], %s679_s22 }
 0x138   : > { %p830_p6 = pnand %p1477_p5, %p1148_p11 }
 0x13a   : > { %p831_p4 = pneg %p830_p6 }
 0x13c   : > { %1032 = dma.done.wait (%p831_p4), %s680_s23, 48  }
 0x13d   : > { %1034 = vsyncadd (%p831_p4), %s680_s23, 4294967248  ;;  %s689_s15 = scalar_lea.sflag [#allocation9], %s679_s22 }
 0x13e   : > { %1036 = dma.done.wait (%p831_p4), %s689_s15, 48  }
 0x13f   : > { %1038 = vsyncadd (%p831_p4), %s689_s15, 4294967248  ;;  %s23_s17 = sadd.s32 1, %s1061_s17   ;;  %s1478_s12 = smov %s1045_s13 }
 0x140   : > { %p20_p7 = scmp.ge.s32.totalorder %s23_s17, 4   ;;  %s1479_s13 = smov %s1049_s14 }
 0x141   : > { %s1480_s14 = smov %s1146_s26  ;;  %s1481_s15 = smov %s1057_s16 }
 0x142   : > { %s1482_s16 = smov %s1484_s20  ;;  %22 = sbr.rel (!%p20_p7) target bundleno = 8 (0x8), region = 93 }
 0x147   :  { %694 = vsyncpa [#allocation5], 1 }
 0x148   :  { %696 = vsyncpa [#allocation5 + $0x1], 1 }
 0x149   :  { %697 = vsyncpa [#allocation6], 1 }
 0x14a   :  { %699 = vsyncpa [#allocation6 + $0x1], 1 }
 0x14b   :  { %700 = vsyncpa [#allocation9], 1 }
 0x14c   :  { %702 = vsyncpa [#allocation9 + $0x1], 1 }

</bundles_post_ra>
